<compile_context>
chip_gen: v7x
topology: tpu7x:2x2x1
jax: 0.10.0
libtpu: 0.0.40
codegen_flags: <defaults>
</compile_context>

<pallas_src>
import math

import numpy as np
import jax
import jax.numpy as jnp
from jax.experimental import pallas as pl
from jax.experimental.pallas import tpu as pltpu


# ---------------------------------------------------------------------------
# Host-side construction of the bicubic interpolation matrix (matches PyTorch
# upsample_bicubic2d: align_corners=False, cubic coefficient A=-0.75, border
# values replicated by index clamping with weight accumulation).
# ---------------------------------------------------------------------------
def _bicubic_matrix(out_size: int, in_size: int) -> np.ndarray:
    A = -0.75

    def w1(t):  # |t| <= 1
        return ((A + 2.0) * t - (A + 3.0)) * t * t + 1.0

    def w2(t):  # 1 < |t| < 2
        return ((A * t - 5.0 * A) * t + 8.0 * A) * t - 4.0 * A

    scale = in_size / out_size
    M = np.zeros((out_size, in_size), dtype=np.float32)
    for i in range(out_size):
        src = (i + 0.5) * scale - 0.5          # area_pixel_compute_source_index
        idx = int(np.floor(src))
        t = src - idx
        weights = (w2(1.0 + t), w1(t), w1(1.0 - t), w2(2.0 - t))
        for k in range(4):
            j = min(max(idx - 1 + k, 0), in_size - 1)   # border clamp
            M[i, j] += weights[k]
    return M


# ---------------------------------------------------------------------------
# Pallas kernel: two lane-dense 2-D MXU matmuls, f32 accumulation.
#   x_ref   : (H, TBC*W)          TBC images side-by-side along lanes
#   wh_ref  : (TH, H)             row-interpolation matrix (grid-invariant)
#   wwt_ref : (TBC*W, TBC*TW)     kron(I_TBC, Ww^T)        (grid-invariant)
#   o_ref   : (TH, TBC*TW)
# ---------------------------------------------------------------------------
def _interp_kernel(wh_ref, wwt_ref, x_ref, o_ref):
    tmp = jnp.dot(wh_ref[...], x_ref[...],
                  preferred_element_type=jnp.float32)          # (TH, TBC*W)
    out = jnp.dot(tmp.astype(wwt_ref.dtype), wwt_ref[...],
                  preferred_element_type=jnp.float32)          # (TH, TBC*TW)
    o_ref[...] = out.astype(o_ref.dtype)


def _pick_tbc(bc, h, w, th, tw, itemsize):
    """Images per grid step: as many as fit comfortably in VMEM, keeping the
    lane dims (TBC*W, TBC*TW) multiples of 128 whenever the BC axis is tiled."""
    vmem_budget = 20 * 1024 * 1024  # stay well under the 32 MiB scoped default

    def vmem_bytes(t):
        # double-buffered x slab + double-buffered out slab + resident weights
        return itemsize * (2 * t * h * w + 2 * t * th * tw
                           + th * h + (t * w) * (t * tw))

    if vmem_bytes(bc) <= vmem_budget:
        return bc                                   # whole batch, single step

    t_in = 128 // math.gcd(128, w)
    t_out = 128 // math.gcd(128, tw)
    base = (t_in * t_out) // math.gcd(t_in, t_out)  # lane dims % 128 == 0
    tbc = base
    while tbc * 2 < bc and vmem_bytes(tbc * 2) <= vmem_budget:
        tbc *= 2
    # TODO(synk): for very large W/TW (where even `base` images blow the VMEM
    # budget) the block-diagonal trick should be replaced by the plain
    # separable per-image path (W is already lane-dense in that regime).
    return tbc


def bicubic_resize_pallas(x: jax.Array, target_h: int, target_w: int,
                          compute_dtype=None) -> jax.Array:
    """x: (B, C, H, W) -> (B, C, target_h, target_w), PyTorch bicubic semantics."""
    B, C, H, W = x.shape
    TH, TW = target_h, target_w
    BC = B * C
    cdt = jnp.dtype(compute_dtype) if compute_dtype is not None else jnp.dtype(x.dtype)
    itemsize = cdt.itemsize

    tbc = _pick_tbc(BC, H, W, TH, TW, itemsize)
    n_blk = -(-BC // tbc)
    bcp = n_blk * tbc

    wh = jnp.asarray(_bicubic_matrix(TH, H), dtype=cdt)                 # (TH, H)
    wwt_blkdiag = np.kron(np.eye(tbc, dtype=np.float32),
                          _bicubic_matrix(TW, W).T)                     # (tbc*W, tbc*TW)
    wwt = jnp.asarray(wwt_blkdiag, dtype=cdt)

    # wrapper-side layout plumbing: (B,C,H,W) -> lane-dense slab (H, BCp*W)
    xf = x.reshape(BC, H, W)
    if bcp != BC:
        xf = jnp.pad(xf, ((0, bcp - BC), (0, 0), (0, 0)))
    xl = jnp.transpose(xf, (1, 0, 2)).reshape(H, bcp * W).astype(cdt)

    out = pl.pallas_call(
        _interp_kernel,
        out_shape=jax.ShapeDtypeStruct((TH, bcp * TW), x.dtype),
        grid=(n_blk,),
        in_specs=[
            # grid-invariant weights: untiled, VMEM-resident, copied once
            pl.BlockSpec(memory_space=pltpu.MemorySpace.VMEM),
            pl.BlockSpec(memory_space=pltpu.MemorySpace.VMEM),
            # x slab for tbc images per grid step (lane-dense last dim)
            pl.BlockSpec((H, tbc * W), lambda i: (0, i)),
        ],
        out_specs=pl.BlockSpec((TH, tbc * TW), lambda i: (0, i)),
        compiler_params=pltpu.CompilerParams(
            dimension_semantics=("parallel",)),   # independent image blocks
    )(wh, wwt, xl)

    out = out[:, : BC * TW].reshape(TH, BC, TW)
    out = jnp.transpose(out, (1, 0, 2)).reshape(B, C, TH, TW)
    return out


# ---------------------------------------------------------------------------
# Module forward (glue around the kernel)
# ---------------------------------------------------------------------------
def _split_to_patches(x: jax.Array, n_h: int, n_w: int, p: int) -> jax.Array:
    # 'B C (n_h p_h) (n_w p_w) -> B (n_h n_w) C p_h p_w'
    B, C, H, W = x.shape
    x = x.reshape(B, C, n_h, p, n_w, p)
    x = jnp.transpose(x, (0, 2, 4, 1, 3, 5))
    return x.reshape(B, n_h * n_w, C, p, p)


def interpolate_split_block(x, num_patches, fm_input_size, input_size,
                            compute_dtype=None):
    B, C, H, W = x.shape
    all_patches = []
    # TODO(synk): when several distinct target sizes need interpolation, they
    # could be fused into one multi-output pallas_call so x streams from HBM once.
    for n_h, n_w in num_patches:
        target_h = n_h * fm_input_size
        target_w = n_w * fm_input_size
        if (input_size[0], input_size[1]) != (target_h, target_w):
            scaled_x = bicubic_resize_pallas(x, target_h, target_w,
                                             compute_dtype=compute_dtype)
        else:
            scaled_x = x
        all_patches.append(_split_to_patches(scaled_x, n_h, n_w, fm_input_size))
    out = jnp.concatenate(all_patches, axis=1)          # (B, n_p_total, C, p, p)
    Bo, NP = out.shape[0], out.shape[1]
    # '(B n_p) C p_h p_w'
    return out.reshape(Bo * NP, C, fm_input_size, fm_input_size)


if __name__ == "__main__":
    key = jax.random.PRNGKey(0)
    B, C, H, W = 2, 4, 16, 16
    fm_input_size = 8
    num_patches = [(1, 1), (2, 2)]   # 1x1 -> 8x8 (needs interp), 2x2 -> 16x16 (identity)
    input_size = (H, W)

    x = jax.random.normal(key, (B, C, H, W), dtype=jnp.float32)

    out = interpolate_split_block(x, num_patches, fm_input_size, input_size)
    out = jax.block_until_ready(out)
    assert out.shape == (B * (1 * 1 + 2 * 2), C, fm_input_size, fm_input_size), out.shape

    # strict check: Pallas interpolation vs pure-JAX reference of the same math
    wh = jnp.asarray(_bicubic_matrix(fm_input_size, H))
    wwt = jnp.asarray(_bicubic_matrix(fm_input_size, W).T)
    ref = jnp.einsum('th,bchw,wu->bctu', wh, x, wwt)
    got = bicubic_resize_pallas(x, fm_input_size, fm_input_size)
    got = jax.block_until_ready(got)
    assert jnp.allclose(got, ref, atol=1e-4), float(jnp.max(jnp.abs(got - ref)))

    # bf16 compute path (halves HBM traffic on v6e/v7x); loose tolerance check
    got_bf16 = bicubic_resize_pallas(x, fm_input_size, fm_input_size,
                                     compute_dtype=jnp.bfloat16)
    got_bf16 = jax.block_until_ready(got_bf16)
    assert jnp.allclose(got_bf16, ref, atol=2.5e-1), \
        float(jnp.max(jnp.abs(got_bf16 - ref)))

    print("KERNEL_OK")
</pallas_src>

<mosaic_0001>
module attributes {stable_mosaic.version = 11 : i64} {
  func.func @_interp_kernel(%arg0: i32, %arg1: memref<8x16xf32, #tpu.memory_space<vmem>>, %arg2: memref<128x64xf32, #tpu.memory_space<vmem>>, %arg3: memref<16x128xf32, #tpu.memory_space<vmem>>, %arg4: memref<8x64xf32, #tpu.memory_space<vmem>>) attributes {dimension_semantics = [#tpu.dimension_semantics<parallel>], iteration_bounds = array<i64: 1>, scalar_prefetch = 0 : i64, scratch_operands = 0 : i64, tpu.core_type = #tpu.core_type<tc>, window_params = [{pipeline_mode = #tpu.pipeline_mode<synchronous>, transform_indices = @transform_0, window_bounds = array<i64: 8, 16>}, {pipeline_mode = #tpu.pipeline_mode<synchronous>, transform_indices = @transform_1, window_bounds = array<i64: 128, 64>}, {transform_indices = @transform_2, window_bounds = array<i64: 16, 128>}, {transform_indices = @transform_3, window_bounds = array<i64: 8, 64>}]} {
    %c0 = arith.constant 0 : index
    %c0_0 = arith.constant 0 : index
    %0 = vector.load %arg1[%c0, %c0_0] : memref<8x16xf32, #tpu.memory_space<vmem>>, vector<8x16xf32>
    %c0_1 = arith.constant 0 : index
    %c0_2 = arith.constant 0 : index
    %1 = vector.load %arg3[%c0_1, %c0_2] : memref<16x128xf32, #tpu.memory_space<vmem>>, vector<16x128xf32>
    %cst = arith.constant dense<0.000000e+00> : vector<8x128xf32>
    %2 = tpu.matmul %0, %1, %cst {dimension_numbers = #tpu.dot_dimension_numbers<[1], [0], [0], [1], [0, 0, 1, 1], [], []>} : vector<8x16xf32>, vector<16x128xf32>, vector<8x128xf32> -> vector<8x128xf32>
    %c0_3 = arith.constant 0 : index
    %c0_4 = arith.constant 0 : index
    %3 = vector.load %arg2[%c0_3, %c0_4] : memref<128x64xf32, #tpu.memory_space<vmem>>, vector<128x64xf32>
    %cst_5 = arith.constant dense<0.000000e+00> : vector<8x64xf32>
    %4 = tpu.matmul %2, %3, %cst_5 {dimension_numbers = #tpu.dot_dimension_numbers<[1], [0], [0], [1], [0, 0, 1, 1], [], []>} : vector<8x128xf32>, vector<128x64xf32>, vector<8x64xf32> -> vector<8x64xf32>
    %c0_6 = arith.constant 0 : index
    %c0_7 = arith.constant 0 : index
    %5 = vector.load %arg4[%c0_6, %c0_7] : memref<8x64xf32, #tpu.memory_space<vmem>>, vector<8x64xf32>
    tpu.vector_store %arg4[%c0_6, %c0_7], %4 {strides = array<i32>} : memref<8x64xf32, #tpu.memory_space<vmem>>, vector<8x64xf32>,
    return
  }
  func.func @transform_0(%arg0: i32) -> (i32, i32) {
    %c0_i32 = arith.constant 0 : i32
    %c0_i32_0 = arith.constant 0 : i32
    %c0_i32_1 = arith.constant 0 : i32
    return %c0_i32, %c0_i32_0 : i32, i32
  }
  func.func @transform_1(%arg0: i32) -> (i32, i32) {
    %c0_i32 = arith.constant 0 : i32
    %c0_i32_0 = arith.constant 0 : i32
    %c0_i32_1 = arith.constant 0 : i32
    return %c0_i32, %c0_i32_0 : i32, i32
  }
  func.func @transform_2(%arg0: i32) -> (i32, i32) {
    %c0_i32 = arith.constant 0 : i32
    %c0_i32_0 = arith.constant 0 : i32
    return %c0_i32, %arg0 : i32, i32
  }
  func.func @transform_3(%arg0: i32) -> (i32, i32) {
    %c0_i32 = arith.constant 0 : i32
    %c0_i32_0 = arith.constant 0 : i32
    return %c0_i32, %arg0 : i32, i32
  }
}

</mosaic_0001>

<bundles_post_ra>
// kernel: tpu_custom_call.1
= control target key start
LH: loop header
LB: loop body
LE: loop exit
PB: predicated region body
PF: predicated region fallthrough
CT: control target
= control target key end

     0   :  { %v312_v2 = vmov 0.0|0.0   ;;  %vm313_vm0 = vmmov 0   ;;  %v314_v4 = vmov 0.0   ;;  %vm18_vm1 = vcmask 130048   ;;  %s405_s0 = inlined_call_operand.vmem [shape: f32[8,16], index: 0, kind: input, shape index: {}]   ;;  %s406_s1 = inlined_call_operand.vmem [shape: f32[128,64], index: 1, kind: input, shape index: {}]   ;;  %s407_s2 = inlined_call_operand.vmem [shape: f32[16,128], index: 2, kind: input, shape index: {}]   ;;  %s408_s3 = inlined_call_operand.hbm [shape: f32[8,64], index: 3, kind: output, shape index: {}]  }
   0x1   :  { %v16_v0 = vld [vmem:[%s407_s2] sm:$0xff]  ;;  %v17_v1 = vld [vmem:[%s407_s2 + $0x8] sm:$0xff]  ;;  %257 = vmatprep.subr.bf16.mxu0 %v312_v2  ;;  %219 = vmatprep.mubr.msk.f32.mxu0 %vm313_vm0, %v314_v4  ;;  %v94_v7 = vld [vmem:[%s406_s1 + $0x10] sm:$0xff] }
   0x2   :  { %v258_v3 = vpack.c.bf16 %v17_v1, %v16_v0  ;;  %v92_v5 = vld [vmem:[%s406_s1] sm:$0xff]  ;;  %v93_v6 = vld [vmem:[%s406_s1 + $0x8] sm:$0xff]  ;;  %260 = vmatprep.subr.bf16.mxu1 %v312_v2  ;;  %v95_v9 = vld [vmem:[%s406_s1 + $0x18] sm:$0xff]  ;;  %254 = vmatprep.mubr.msk.f32.mxu1 %vm313_vm0, %v314_v4 }
   0x3   :  { %v261_v8 = vpack.c.bf16 %v93_v6, %v92_v5  ;;  %v15_v10 = vld [vmem:[%s405_s0] sm:$0xff]  ;;  %v264_v11 = vpack.c.bf16 %v95_v9, %v94_v7  ;;  %v97_v13 = vld [vmem:[%s406_s1 + $0x28] sm:$0xff] }
   0x4   :  { %259 = vmatpush3.bf16.msra.mxu0 %v258_v3  ;;  %v96_v12 = vld [vmem:[%s406_s1 + $0x20] sm:$0xff] }
   0x5   :  { %262 = vmatpush3.bf16.msra.mxu1 %v261_v8 }
   0x6   :  { %263 = vmatprep.subr.bf16.mxu1 %v312_v2 }
   0x7   :  { %220 = vmatmul.mubr.msk.f32.vlgmr.msra.gmra.mrb[0].mxu0 %vm18_vm1, %v15_v10 }
   0x8   :  { %8 = vsyncpa [#allocation3], 0  ;;  %v267_v14 = vpack.c.bf16 %v97_v13, %v96_v12  ;;  %v98_v15 = vld [vmem:[%s406_s1 + $0x30] sm:$0xff]  ;;  %v99_v16 = vld [vmem:[%s406_s1 + $0x38] sm:$0xff]  ;;  %s315_s21 = smov [#allocation2]   ;;  %vm178_vm2 = vcmask 523264  }
   0x9   :  { %265 = vmatpush3.bf16.msra.mxu1 %v264_v11  ;;  %v270_v17 = vpack.c.bf16 %v99_v16, %v98_v15  ;;  %v100_v18 = vld [vmem:[%s406_s1 + $0x40] sm:$0xff]  ;;  %v101_v19 = vld [vmem:[%s406_s1 + $0x48] sm:$0xff]  ;;  %v102_v21 = vld [vmem:[%s406_s1 + $0x50] sm:$0xff]  ;;  %s186_s2 = sshll.u32 %s315_s21, 4  ;;  %s187_s2 = int_to_ptr.vmem [resolvable:$true] %s186_s2 }
   0xa   :  { %266 = vmatprep.subr.bf16.mxu1 %v312_v2  ;;  %v273_v20 = vpack.c.bf16 %v101_v19, %v100_v18  ;;  %v103_v22 = vld [vmem:[%s406_s1 + $0x58] sm:$0xff]  ;;  %v104_v24 = vld [vmem:[%s406_s1 + $0x60] sm:$0xff]  ;;  %v105_v25 = vld [vmem:[%s406_s1 + $0x68] sm:$0xff]  ;;  %s288_s22 = scalar_lea.vmem %s187_s2, 128  ;;  %p293_p1 = scmp.lt.s32.totalorder %s187_s2, %s187_s2 }
   0xb   :  { %v276_v23 = vpack.c.bf16 %v103_v22, %v102_v21  ;;  %v279_v26 = vpack.c.bf16 %v105_v25, %v104_v24  ;;  %v106_v27 = vld [vmem:[%s406_s1 + $0x70] sm:$0xff]  ;;  %v107_v28 = vld [vmem:[%s406_s1 + $0x78] sm:$0xff]  ;;  %p289_p0 = scmp.ne.s32.totalorder %s187_s2, %s288_s22  ;;  %p294_p2 = scmp.lt.s32.totalorder %s288_s22, %s288_s22 }
   0xc   :  { %v282_v29 = vpack.c.bf16 %v107_v28, %v106_v27 }
   0xd   :  { %268 = vmatpush3.bf16.msra.mxu1 %v267_v14  ;;  %p295_p3 = por %p294_p2, %p293_p1 }
   0xe   :  { %269 = vmatprep.subr.bf16.mxu1 %v312_v2 }
   0xf   :  { %p296_p4 = pnand %p295_p3, %p289_p0 }
  0x11   :  { %271 = vmatpush3.bf16.msra.mxu1 %v270_v17 }
  0x12   :  { %272 = vmatprep.subr.bf16.mxu1 %v312_v2 }
  0x15   :  { %274 = vmatpush3.bf16.msra.mxu1 %v273_v20 }
  0x16   :  { %275 = vmatprep.subr.bf16.mxu1 %v312_v2 }
  0x19   :  { %277 = vmatpush3.bf16.msra.mxu1 %v276_v23 }
  0x1a   :  { %278 = vmatprep.subr.bf16.mxu1 %v312_v2 }
  0x1d   :  { %280 = vmatpush3.bf16.msra.mxu1 %v279_v26 }
  0x1e   :  { %281 = vmatprep.subr.bf16.mxu1 %v312_v2 }
  0x21   :  { %283 = vmatpush3.bf16.msra.mxu1 %v282_v29 }
  0xda   :  { %v88_v30 = vpop.f32.mrb[0].mxu0 }
  0xdb   :  { %v221_v31 = vpop.f32.mrb[1].mxu0  ;;  %255 = vmatmul.mubr.f32.vlgmr.msra.gmra.mrb[0].mxu1 %v88_v30 }
 0x1ae   :  { %v174_v32 = vpop.f32.mrb[0].mxu1 }
 0x1af   :  { %179 = vst.msk [vmem:[#allocation2] sm:$0xff] %vm178_vm2, %v174_v32  ;;  %v256_v33 = vpop.f32.mrb[1].mxu1 }
 0x1b0   :  { %299 = shalt.err (!%p296_p4)
}
 0x1b1   :  { %s300_s24 = scalar_lea.hbm %s408_s3, 128 }
 0x1b2   :  { %p301_p5 = scmp.ne.s32.totalorder %s408_s3, %s300_s24  ;;  %p304_p6 = scmp.lt.u32.totalorder %s300_s24, %s408_s3 }
 0x1b4   :  { %p306_p7 = pnand %p304_p6, %p301_p5 }
 0x1b6   :  { %309 = shalt.err (!%p306_p7)
}
 0x1b7   :  { %189 = dma.vmem_to_hbm [thread:$0]  %s187_s2, 128, %s408_s3, [#allocation3]  }
 0x1b8   :  { %310 = dma.done.wait [#allocation3], 128  }
 0x1b9   :  { %311 = vsyncadd [#allocation3], 4294967168 }
 0x1ba   :  { %193 = vsyncpa [#allocation3], 1 }

</bundles_post_ra>
